<compile_context>
chip_gen: v5e
topology: v5e:2x2
jax: 0.10.0
libtpu: 0.0.40
codegen_flags: <defaults>
</compile_context>

<pallas_src>
import math
import functools

import jax
import jax.numpy as jnp
from jax import lax
from jax.experimental import pallas as pl
from jax.experimental.pallas import tpu as pltpu

_EPS = 1e-12  # F.normalize default eps


def _arc_margin_kernel(xn_ref, w_ref, lab_ref, out_ref, *,
                       s, cos_m, sin_m, th, mm, easy_margin, tile_n):
    xn = xn_ref[...]                      # (B, K), pre-normalized, pre-cast
    w = w_ref[...]                        # (tile_n, K), storage dtype (f32/bf16)
    lab = lab_ref[...]                    # (B, 1) int32

    # Un-normalized logits on the MXU (NT dot_general: contraction on the lane
    # axis of both operands, so the weight tile is never transposed/copied).
    dots = lax.dot_general(
        xn, w,
        dimension_numbers=(((1,), (1,)), ((), ())),
        preferred_element_type=jnp.float32)                    # (B, tile_n) f32

    # Per-row weight sum-of-squares, computed with a ones-row matmul so the
    # result is lane-oriented (1, tile_n).  Normalizing the matmul OUTPUT
    # (cosine = dots * rsqrt(w_ss)) is mathematically identical to normalizing
    # the weight rows first, but avoids materializing a (tile_n, K) temporary.
    w32 = w.astype(jnp.float32)           # no-op for the default f32 weights
    ones_row = jnp.ones((1, w.shape[1]), jnp.float32)
    w_ss = lax.dot_general(
        ones_row, w32 * w32,
        dimension_numbers=(((1,), (1,)), ((), ())),
        preferred_element_type=jnp.float32)                    # (1, tile_n)
    inv_wn = lax.rsqrt(jnp.maximum(w_ss, _EPS * _EPS))          # (1, tile_n)
    cosine = dots * inv_wn                                      # (B, tile_n)

    # Margin math only for the label column: extract each row's label cosine
    # with a masked lane reduce, run sqrt/phi/threshold on the (B, 1) vector,
    # then blend with a single select over the tile.
    b, tn = cosine.shape
    col_ids = (lax.broadcasted_iota(jnp.int32, (b, tn), 1)
               + pl.program_id(0) * tile_n)
    is_label = col_ids == lab                                   # (B, tile_n)
    label_cos = jnp.sum(jnp.where(is_label, cosine, 0.0),
                        axis=-1, keepdims=True)                 # (B, 1)

    sine = jnp.sqrt(jnp.clip(1.0 - label_cos * label_cos, 1e-07, 1.0))
    phi = label_cos * cos_m - sine * sin_m
    if easy_margin:
        phi = jnp.where(label_cos > 0.0, phi, label_cos)
    else:
        phi = jnp.where(label_cos > th, phi, label_cos - mm)

    # TODO(synk): the data-dependent torch.isnan(phi).any() host print has no
    # clean in-kernel equivalent; omitted.

    out_ref[...] = (jnp.where(is_label, phi, cosine) * s).astype(out_ref.dtype)


def arc_margin_product(x, weight, label, *, s=16.0, m=0.4, easy_margin=False,
                       tile_n=2048, use_bf16_matmul=False,
                       out_dtype=jnp.float32):
    """x: (B, in_features), weight: (out_features, in_features), label: (B,).
    Returns (B, out_features) ArcFace logits (already scaled by s)."""
    B, K = x.shape
    OF, K_w = weight.shape
    assert K == K_w, "weight in_features mismatch"

    # --- hoist x normalization (and optional bf16 cast) out of the grid loop -
    x32 = x.astype(jnp.float32)
    x_ss = jnp.sum(x32 * x32, axis=1, keepdims=True)
    x_n = x32 * lax.rsqrt(jnp.maximum(x_ss, _EPS * _EPS))
    in_dtype = jnp.bfloat16 if use_bf16_matmul else jnp.float32
    x_n = x_n.astype(in_dtype)
    w_in = weight.astype(in_dtype)        # bf16 halves the streamed weight bytes
    lab2d = label.astype(jnp.int32).reshape(B, 1)

    # --- VMEM-aware tile_n selection -----------------------------------------
    def _pad(v, mult):
        return ((v + mult - 1) // mult) * mult

    try:
        vmem_cap = int(pltpu.get_tpu_info().vmem_capacity_bytes)
    except Exception:
        vmem_cap = 64 * 1024 * 1024       # v7x worst case per TensorCore
    budget = int(0.70 * vmem_cap)

    ibytes = jnp.dtype(in_dtype).itemsize
    obytes = jnp.dtype(out_dtype).itemsize
    Kp, Bp = _pad(K, 128), _pad(B, 8)

    # Residents: x_n + label (conservatively counted double-buffered).
    resident = 2 * Bp * Kp * ibytes + 2 * Bp * 128 * 4
    # Per unit of tile_n: double-buffered weight rows + output columns.
    per_col = 2 * Kp * ibytes + 2 * Bp * obytes
    tile_cap = max(128, (budget - resident) // per_col)

    tn = min(tile_n, OF, tile_cap)
    if tn >= OF:
        tn = OF                                            # single full-width tile
        # (On v7x a >=2-step grid would let both TensorCores work; left as-is
        # since splitting hurts the single-core v5e/v6e per-step overhead.)
    else:
        tn = max(128, (tn // 128) * 128)                   # lane-dense output tiles
        # Prefer an exact divisor of out_features (no ragged tail) if one
        # exists within 2x; otherwise Pallas masks the final partial tile.
        for cand in range(tn, max(128, tn // 2) - 1, -128):
            if OF % cand == 0:
                tn = cand
                break
    grid_len = (OF + tn - 1) // tn

    need = resident + per_col * tn
    vmem_limit = min(int(0.9 * vmem_cap),
                     max(32 * 1024 * 1024, int(1.25 * need) + (2 << 20)))

    cos_m = math.cos(m)
    sin_m = math.sin(m)
    th = math.cos(math.pi - m)
    mm = math.sin(math.pi - m) * m

    kernel = functools.partial(
        _arc_margin_kernel,
        s=float(s), cos_m=cos_m, sin_m=sin_m, th=th, mm=mm,
        easy_margin=easy_margin, tile_n=tn)

    cost = pl.CostEstimate(
        flops=2 * B * OF * K + 2 * OF * K,                 # cosine matmul + w_ss
        transcendentals=OF + B * grid_len,                 # rsqrt + per-tile sqrt
        bytes_accessed=(B * K * ibytes + OF * K * ibytes
                        + 4 * B + B * OF * obytes))

    return pl.pallas_call(
        kernel,
        out_shape=jax.ShapeDtypeStruct((B, OF), out_dtype),
        grid_spec=pltpu.PrefetchScalarGridSpec(
            num_scalar_prefetch=0,
            grid=(grid_len,),
            in_specs=[
                pl.BlockSpec((B, K), lambda j: (0, 0)),       # x_n (resident)
                pl.BlockSpec((tn, K), lambda j: (j, 0)),      # weight tile (streamed)
                pl.BlockSpec((B, 1), lambda j: (0, 0)),       # label (resident)
            ],
            out_specs=pl.BlockSpec((B, tn), lambda j: (0, j)),  # lane-dense output
        ),
        compiler_params=pltpu.CompilerParams(
            dimension_semantics=("parallel",),
            vmem_limit_bytes=int(vmem_limit)),
        cost_estimate=cost,
    )(x_n, w_in, lab2d)


def arc_margin_product_ref(x, weight, label, *, s=16.0, m=0.4, easy_margin=False):
    """Pure-JAX reference matching the PyTorch forward (full-precision matmul)."""
    eps = 1e-12
    x_n = x / jnp.maximum(jnp.linalg.norm(x, axis=1, keepdims=True), eps)
    w_n = weight / jnp.maximum(jnp.linalg.norm(weight, axis=1, keepdims=True), eps)
    cosine = jnp.dot(x_n, w_n.T, precision=jax.lax.Precision.HIGHEST)
    sine = jnp.sqrt(jnp.clip(1.0 - cosine ** 2, 1e-07, 1.0))
    cos_m, sin_m = math.cos(m), math.sin(m)
    th, mm = math.cos(math.pi - m), math.sin(math.pi - m) * m
    phi = cosine * cos_m - sine * sin_m
    if easy_margin:
        phi = jnp.where(cosine > 0, phi, cosine)
    else:
        phi = jnp.where(cosine > th, phi, cosine - mm)
    one_hot = jax.nn.one_hot(label, cosine.shape[1], dtype=cosine.dtype)
    return (one_hot * phi + (1.0 - one_hot) * cosine) * s


if __name__ == "__main__":
    # Small, module-consistent shapes: batch=8, in_features=32, out_features=128.
    B, IN_F, OUT_F = 8, 32, 128
    key = jax.random.PRNGKey(0)
    kx, kw, kl = jax.random.split(key, 3)

    x = jax.random.normal(kx, (B, IN_F), dtype=jnp.float32)

    # Deterministic xavier_uniform_-style init for weight (out_features, in_features).
    bound = math.sqrt(6.0 / (IN_F + OUT_F))
    weight = jax.random.uniform(kw, (OUT_F, IN_F), dtype=jnp.float32,
                                minval=-bound, maxval=bound)

    label = jax.random.randint(kl, (B,), 0, OUT_F, dtype=jnp.int32)

    out = arc_margin_product(x, weight, label, s=16.0, m=0.4, easy_margin=False)
    out = jax.block_until_ready(out)

    ref = arc_margin_product_ref(x, weight, label, s=16.0, m=0.4, easy_margin=False)
    assert out.shape == (B, OUT_F)
    max_err = float(jnp.max(jnp.abs(out - ref)))
    # 2.5e-2 on logits in [-16, 16] (~0.16% of scale): tolerant of any reduced-
    # precision MXU pass, while blend/margin/scale logic bugs give O(1) errors.
    assert max_err < 2.5e-2, f"mismatch vs reference: max abs err {max_err}"

    print("KERNEL_OK")
</pallas_src>

<mosaic_0001>
module attributes {stable_mosaic.version = 11 : i64} {
  func.func @_arc_margin_kernel(%arg0: i32, %arg1: memref<8x32xf32, #tpu.memory_space<vmem>>, %arg2: memref<128x32xf32, #tpu.memory_space<vmem>>, %arg3: memref<8x1xi32, #tpu.memory_space<vmem>>, %arg4: memref<8x128xf32, #tpu.memory_space<vmem>>) attributes {dimension_semantics = [#tpu.dimension_semantics<parallel>], iteration_bounds = array<i64: 1>, scalar_prefetch = 0 : i64, scratch_operands = 0 : i64, tpu.core_type = #tpu.core_type<tc>, window_params = [{pipeline_mode = #tpu.pipeline_mode<synchronous>, transform_indices = @transform_0, window_bounds = array<i64: 8, 32>}, {transform_indices = @transform_1, window_bounds = array<i64: 128, 32>}, {pipeline_mode = #tpu.pipeline_mode<synchronous>, transform_indices = @transform_2, window_bounds = array<i64: 8, 1>}, {transform_indices = @transform_3, window_bounds = array<i64: 8, 128>}]} {
    %c0 = arith.constant 0 : index
    %c0_0 = arith.constant 0 : index
    %0 = vector.load %arg1[%c0, %c0_0] : memref<8x32xf32, #tpu.memory_space<vmem>>, vector<8x32xf32>
    %c0_1 = arith.constant 0 : index
    %c0_2 = arith.constant 0 : index
    %1 = vector.load %arg2[%c0_1, %c0_2] : memref<128x32xf32, #tpu.memory_space<vmem>>, vector<128x32xf32>
    %c0_3 = arith.constant 0 : index
    %c0_4 = arith.constant 0 : index
    %2 = vector.load %arg3[%c0_3, %c0_4] : memref<8x1xi32, #tpu.memory_space<vmem>>, vector<8x1xi32>
    %cst = arith.constant dense<0.000000e+00> : vector<8x128xf32>
    %3 = tpu.matmul %0, %1, %cst {dimension_numbers = #tpu.dot_dimension_numbers<[1], [1], [0], [0], [0, 0, 1, 0], [], []>} : vector<8x32xf32>, vector<128x32xf32>, vector<8x128xf32> -> vector<8x128xf32>
    %cst_5 = arith.constant 1.000000e+00 : f32
    %4 = vector.broadcast %cst_5 : f32 to vector<1x32xf32>
    %5 = arith.mulf %1, %1 : vector<128x32xf32>
    %cst_6 = arith.constant dense<0.000000e+00> : vector<1x128xf32>
    %6 = tpu.matmul %4, %5, %cst_6 {dimension_numbers = #tpu.dot_dimension_numbers<[1], [1], [0], [0], [0, 0, 1, 0], [], []>} : vector<1x32xf32>, vector<128x32xf32>, vector<1x128xf32> -> vector<1x128xf32>
    %cst_7 = arith.constant 1.000000e-24 : f32
    %7 = vector.broadcast %cst_7 : f32 to vector<1x128xf32>
    %8 = arith.maximumf %6, %7 : vector<1x128xf32>
    %9 = math.rsqrt %8 : vector<1x128xf32>
    %10 = vector.broadcast %9 : vector<1x128xf32> to vector<8x128xf32>
    %11 = arith.mulf %3, %10 : vector<8x128xf32>
    %12 = tpu.iota {dimensions = array<i32: 1>} : vector<8x128xi32>
    %c128_i32 = arith.constant 128 : i32
    %13 = arith.muli %arg0, %c128_i32 : i32
    %14 = vector.broadcast %13 : i32 to vector<8x128xi32>
    %15 = arith.addi %12, %14 : vector<8x128xi32>
    %16 = vector.broadcast %2 : vector<8x1xi32> to vector<8x128xi32>
    %17 = arith.cmpi eq, %15, %16 : vector<8x128xi32>
    %cst_8 = arith.constant 0.000000e+00 : f32
    %18 = vector.broadcast %cst_8 : f32 to vector<8x128xf32>
    %19 = arith.select %17, %11, %18 : vector<8x128xi1>, vector<8x128xf32>
    %cst_9 = arith.constant dense<0.000000e+00> : vector<8xf32>
    %20 = vector.multi_reduction <add>, %19, %cst_9 [1] : vector<8x128xf32> to vector<8xf32>
    %21 = vector.shape_cast %20 : vector<8xf32> to vector<8x1xf32>
    %22 = arith.mulf %21, %21 : vector<8x1xf32>
    %cst_10 = arith.constant 1.000000e+00 : f32
    %23 = vector.broadcast %cst_10 : f32 to vector<8x1xf32>
    %24 = arith.subf %23, %22 : vector<8x1xf32>
    %cst_11 = arith.constant 1.000000e-07 : f32
    %cst_12 = arith.constant 1.000000e+00 : f32
    %25 = vector.broadcast %cst_11 : f32 to vector<8x1xf32>
    %26 = arith.maximumf %25, %24 : vector<8x1xf32>
    %27 = vector.broadcast %cst_12 : f32 to vector<8x1xf32>
    %28 = arith.minimumf %27, %26 : vector<8x1xf32>
    %29 = math.sqrt %28 : vector<8x1xf32>
    %cst_13 = arith.constant 0.921060979 : f32
    %30 = vector.broadcast %cst_13 : f32 to vector<8x1xf32>
    %31 = arith.mulf %21, %30 : vector<8x1xf32>
    %cst_14 = arith.constant 0.389418334 : f32
    %32 = vector.broadcast %cst_14 : f32 to vector<8x1xf32>
    %33 = arith.mulf %29, %32 : vector<8x1xf32>
    %34 = arith.subf %31, %33 : vector<8x1xf32>
    %cst_15 = arith.constant -0.921060979 : f32
    %35 = vector.broadcast %cst_15 : f32 to vector<8x1xf32>
    %36 = arith.cmpf ogt, %21, %35 : vector<8x1xf32>
    %cst_16 = arith.constant 0.155767336 : f32
    %37 = vector.broadcast %cst_16 : f32 to vector<8x1xf32>
    %38 = arith.subf %21, %37 : vector<8x1xf32>
    %39 = arith.select %36, %34, %38 : vector<8x1xi1>, vector<8x1xf32>
    %40 = vector.shape_cast %39 : vector<8x1xf32> to vector<8x1xf32>
    %41 = vector.broadcast %40 : vector<8x1xf32> to vector<8x128xf32>
    %42 = arith.select %17, %41, %11 : vector<8x128xi1>, vector<8x128xf32>
    %cst_17 = arith.constant 1.600000e+01 : f32
    %43 = vector.broadcast %cst_17 : f32 to vector<8x128xf32>
    %44 = arith.mulf %42, %43 : vector<8x128xf32>
    %c0_18 = arith.constant 0 : index
    %c0_19 = arith.constant 0 : index
    %45 = vector.load %arg4[%c0_18, %c0_19] : memref<8x128xf32, #tpu.memory_space<vmem>>, vector<8x128xf32>
    tpu.vector_store %arg4[%c0_18, %c0_19], %44 {strides = array<i32>} : memref<8x128xf32, #tpu.memory_space<vmem>>, vector<8x128xf32>,
    return
  }
  func.func @transform_0(%arg0: i32) -> (i32, i32) {
    %c0_i32 = arith.constant 0 : i32
    %c0_i32_0 = arith.constant 0 : i32
    %c0_i32_1 = arith.constant 0 : i32
    return %c0_i32, %c0_i32_0 : i32, i32
  }
  func.func @transform_1(%arg0: i32) -> (i32, i32) {
    %c0_i32 = arith.constant 0 : i32
    %c0_i32_0 = arith.constant 0 : i32
    return %arg0, %c0_i32 : i32, i32
  }
  func.func @transform_2(%arg0: i32) -> (i32, i32) {
    %c0_i32 = arith.constant 0 : i32
    %c0_i32_0 = arith.constant 0 : i32
    %c0_i32_1 = arith.constant 0 : i32
    return %c0_i32, %c0_i32_0 : i32, i32
  }
  func.func @transform_3(%arg0: i32) -> (i32, i32) {
    %c0_i32 = arith.constant 0 : i32
    %c0_i32_0 = arith.constant 0 : i32
    return %c0_i32, %arg0 : i32, i32
  }
}

</mosaic_0001>

<bundles_post_ra>
// kernel: tpu_custom_call.1
= control target key start
LH: loop header
LB: loop body
LE: loop exit
PB: predicated region body
PF: predicated region fallthrough
CT: control target
= control target key end

     0   :  { %vm33_vm0 = vcmask 261120   ;;  %s443_s0 = inlined_call_operand.vmem [shape: f32[8,32], index: 0, kind: input, shape index: {}]   ;;  %s444_s1 = inlined_call_operand.vmem [shape: f32[128,32], index: 1, kind: input, shape index: {}]   ;;  %s445_s2 = inlined_call_operand.vmem [shape: s32[8,1], index: 2, kind: input, shape index: {}]   ;;  %s446_s3 = inlined_call_operand.hbm [shape: f32[8,128], index: 3, kind: output, shape index: {}]  }
   0x1   :  { %v31_v0 = vld [vmem:[%s444_s1 + $0x78] sm:$0xff]  ;;  %v30_v1 = vld [vmem:[%s444_s1 + $0x70] sm:$0xff] }
   0x2   :  { %v120_v2 = vmul.f32 %v31_v0, %v31_v0  ;;  %258 = vmatpush.xpose.msk.msra.mxu0 %vm33_vm0, %v31_v0  ;;  %v119_v3 = vmul.f32 %v30_v1, %v30_v1 }
   0x4   :  { %275 = vmatpush.xpose.msk.msra.mxu1 %vm33_vm0, %v120_v2 }
   0x5   :  { %8 = vsyncpa [#allocation3], 0  ;;  %v29_v4 = vld [vmem:[%s444_s1 + $0x68] sm:$0xff]  ;;  %v28_v6 = vld [vmem:[%s444_s1 + $0x60] sm:$0xff]  ;;  %v327_v21 = vmov 0   ;;  %v328_v35 = vmov 1.0   ;;  %v205_v42 = vlaneseq }
   0x6   :  { %259 = vmatpush.xpose.msk.msra.mxu0 %vm33_vm0, %v30_v1  ;;  %v118_v5 = vmul.f32 %v29_v4, %v29_v4  ;;  %v117_v7 = vmul.f32 %v28_v6, %v28_v6  ;;  %v27_v8 = vld [vmem:[%s444_s1 + $0x58] sm:$0xff]  ;;  %v26_v10 = vld [vmem:[%s444_s1 + $0x50] sm:$0xff]  ;;  %v25_v12 = vld [vmem:[%s444_s1 + $0x48] sm:$0xff]  ;;  %296 = vset.pattern.permute.xlu0 %v327_v21  ;;  %s249_s22 = sshll.u32 %s446_s3, 4  ;;  %s250_s22 = int_to_ptr.hbm [resolvable:$true] %s249_s22 }
   0x7   :  { %v116_v9 = vmul.f32 %v27_v8, %v27_v8  ;;  %v115_v11 = vmul.f32 %v26_v10, %v26_v10  ;;  %v114_v13 = vmul.f32 %v25_v12, %v25_v12  ;;  %v24_v14 = vld [vmem:[%s444_s1 + $0x40] sm:$0xff]  ;;  %v23_v16 = vld [vmem:[%s444_s1 + $0x38] sm:$0xff]  ;;  %v22_v18 = vld [vmem:[%s444_s1 + $0x30] sm:$0xff]  ;;  %v206_v45 = vand.u32 127, %v205_v42 }
   0x8   :  { %276 = vmatpush.xpose.msk.msra.mxu1 %vm33_vm0, %v119_v3  ;;  %v113_v15 = vmul.f32 %v24_v14, %v24_v14  ;;  %v112_v17 = vmul.f32 %v23_v16, %v23_v16  ;;  %v32_v19 = vld [vmem:[%s445_s2] sm:$0xff]  ;;  %v111_v20 = vmul.f32 %v22_v18, %v22_v18  ;;  %v21_v22 = vld [vmem:[%s444_s1 + $0x28] sm:$0xff]  ;;  %v19_v26 = vld [vmem:[%s444_s1 + $0x18] sm:$0xff] }
   0x9   :  { %211 = vperm.xlu0 %296, %v32_v19   ;;  %v110_v23 = vmul.f32 %v21_v22, %v21_v22  ;;  %v20_v24 = vld [vmem:[%s444_s1 + $0x20] sm:$0xff]  ;;  %v108_v27 = vmul.f32 %v19_v26, %v19_v26  ;;  %v18_v28 = vld [vmem:[%s444_s1 + $0x10] sm:$0xff]  ;;  %v17_v30 = vld [vmem:[%s444_s1 + $0x8] sm:$0xff] }
   0xa   :  { %260 = vmatpush.xpose.msk.msra.mxu0 %vm33_vm0, %v29_v4  ;;  %v109_v25 = vmul.f32 %v20_v24, %v20_v24  ;;  %v107_v29 = vmul.f32 %v18_v28, %v18_v28  ;;  %v106_v31 = vmul.f32 %v17_v30, %v17_v30  ;;  %v16_v32 = vld [vmem:[%s444_s1] sm:$0xff] }
   0xb   :  { %v105_v33 = vmul.f32 %v16_v32, %v16_v32  ;;  %v15_v34 = vld [vmem:[%s443_s0] sm:$0xff]  ;;  %s329_s0 = smov [#allocation2]  }
   0xc   :  { %277 = vmatpush.xpose.msk.msra.mxu1 %vm33_vm0, %v118_v5  ;;  %s247_s1 = sshll.u32 %s329_s0, 4  ;;  %s248_s1 = int_to_ptr.vmem [resolvable:$true] %s247_s1 }
   0xe   :  { %261 = vmatpush.xpose.msk.msra.mxu0 %vm33_vm0, %v28_v6 }
  0x10   :  { %278 = vmatpush.xpose.msk.msra.mxu1 %vm33_vm0, %v117_v7 }
  0x12   :  { %262 = vmatpush.xpose.msk.msra.mxu0 %vm33_vm0, %v27_v8 }
  0x14   :  { %279 = vmatpush.xpose.msk.msra.mxu1 %vm33_vm0, %v116_v9 }
  0x16   :  { %263 = vmatpush.xpose.msk.msra.mxu0 %vm33_vm0, %v26_v10 }
  0x18   :  { %280 = vmatpush.xpose.msk.msra.mxu1 %vm33_vm0, %v115_v11 }
  0x1a   :  { %264 = vmatpush.xpose.msk.msra.mxu0 %vm33_vm0, %v25_v12 }
  0x1c   :  { %281 = vmatpush.xpose.msk.msra.mxu1 %vm33_vm0, %v114_v13 }
  0x1e   :  { %265 = vmatpush.xpose.msk.msra.mxu0 %vm33_vm0, %v24_v14 }
  0x20   :  { %282 = vmatpush.xpose.msk.msra.mxu1 %vm33_vm0, %v113_v15 }
  0x22   :  { %266 = vmatpush.xpose.msk.msra.mxu0 %vm33_vm0, %v23_v16 }
  0x24   :  { %283 = vmatpush.xpose.msk.msra.mxu1 %vm33_vm0, %v112_v17 }
  0x26   :  { %267 = vmatpush.xpose.msk.msra.mxu0 %vm33_vm0, %v22_v18 }
  0x28   :  { %284 = vmatpush.xpose.msk.msra.mxu1 %vm33_vm0, %v111_v20 }
  0x2a   :  { %268 = vmatpush.xpose.msk.msra.mxu0 %vm33_vm0, %v21_v22 }
  0x2c   :  { %285 = vmatpush.xpose.msk.msra.mxu1 %vm33_vm0, %v110_v23 }
  0x2e   :  { %269 = vmatpush.xpose.msk.msra.mxu0 %vm33_vm0, %v20_v24 }
  0x30   :  { %286 = vmatpush.xpose.msk.msra.mxu1 %vm33_vm0, %v109_v25 }
  0x32   :  { %270 = vmatpush.xpose.msk.msra.mxu0 %vm33_vm0, %v19_v26 }
  0x34   :  { %287 = vmatpush.xpose.msk.msra.mxu1 %vm33_vm0, %v108_v27 }
  0x36   :  { %271 = vmatpush.xpose.msk.msra.mxu0 %vm33_vm0, %v18_v28 }
  0x38   :  { %288 = vmatpush.xpose.msk.msra.mxu1 %vm33_vm0, %v107_v29 }
  0x3a   :  { %272 = vmatpush.xpose.msk.msra.mxu0 %vm33_vm0, %v17_v30 }
  0x3c   :  { %289 = vmatpush.xpose.msk.msra.mxu1 %vm33_vm0, %v106_v31 }
  0x3e   :  { %273 = vmatpush.xpose.msk.msra.mxu0 %vm33_vm0, %v16_v32 }
  0x40   :  { %290 = vmatpush.xpose.msk.msra.mxu1 %vm33_vm0, %v105_v33 }
  0x41   :  { %274 = vmatmul.msk.f32.vlgmr.msra.gmra.mxu0 %vm33_vm0, %v15_v34 }
  0x43   :  { %291 = vmatmul.msk.f32.vlgmr.msra.gmra.mxu1 %vm33_vm0, %v328_v35 }
  0x7b   :  { %v212_v46 = vpop.permute.xlu0 %211 }
  0x7c   :  { %vm213_vm4 = vcmp.eq.s32.totalorder %v206_v45, %v212_v46 }
  0xbe   :  { %v102_v47 = vpop.f32.mrf.mxu0 }
  0xc0   :  { %v189_v36 = vpop.f32.mrf.mxu1 }
  0xc1   :  { %v192_v37 = vmax.f32 %v189_v36, 1e-24 }
  0xc3   :  { %297 = vrsqrt.f32 %v192_v37  ;;  %vm199_vm2 = vweird.f32 %v192_v37 }
  0xc9   :  { %v298_v38 = vpop.eup %297 }
  0xca   :  { %v194_v39 = vmul.f32 %v298_v38, %v192_v37  ;;  %vm200_vm1 = vweird.f32 %v298_v38 }
  0xcb   :  { %vm201_vm3 = vmor %vm199_vm2, %vm200_vm1 }
  0xcc   :  { %v195_v40 = vmul.f32 %v298_v38, %v194_v39 }
  0xce   :  { %v196_v41 = vmul.f32 0.5, %v195_v40 }
  0xd0   :  { %v197_v43 = vsub.f32 1.5, %v196_v41 }
  0xd2   :  { %v198_v44 = vmul.f32 %v298_v38, %v197_v43 }
  0xd4   :  { %v202_v48 = vsel %vm201_vm3, %v298_v38, %v198_v44 }
  0xd5   :  { %v203_v49 = vperm.slane %v202_v48, 0 }
  0xd7   :  { %v204_v50 = vmul.f32 %v203_v49, %v102_v47 }
  0xd9   :  { %v214_v51 = vsel %vm213_vm4, %v204_v50, 0.0 }
  0xda   :  { %215 = vadd.xlane.f32.xlu0 %v214_v51 }
 0x14d   :  { %v216_v52 = vpop.xlane.xlu0 %215 }
 0x14e   :  { %v217_v53 = vmul.f32 %v216_v52, %v216_v52  ;;  %v233_v3 = vmul.f32 0.921061, %v216_v52  ;;  %v292_v6 = vadd.f32 -0.15576734, %v216_v52  ;;  %vm236_vm7 = vcmp.gt.f32.partialorder %v216_v52, -0.921061 }
 0x150   :  { %v218_v54 = vsub.f32 1.0, %v217_v53 }
 0x152   :  { %v219_v55 = vmax.f32 %v218_v54, 1e-07 }
 0x154   :  { %v220_v56 = vmin.f32 %v219_v55, 1.0 }
 0x156   :  { %299 = vrsqrt.f32 %v220_v56  ;;  %vm228_vm5 = vcmp.eq.f32.partialorder %v220_v56, inf  ;;  %v231_v0 = vand.u32 2147483648, %v220_v56  ;;  %vm230_vm6 = vcmp.eq.f32.partialorder %v220_v56, 0.0 }
 0x15c   :  { %v300_v57 = vpop.eup %299 }
 0x15d   :  { %v222_v58 = vmul.f32 %v300_v57, %v220_v56 }
 0x15f   :  { %v223_v59 = vmul.f32 %v300_v57, %v222_v58 }
 0x161   :  { %v224_v60 = vmul.f32 0.5, %v223_v59 }
 0x163   :  { %v225_v61 = vsub.f32 1.5, %v224_v60 }
 0x165   :  { %v226_v62 = vmul.f32 %v300_v57, %v225_v61 }
 0x167   :  { %v227_v63 = vmul.f32 %v226_v62, %v220_v56 }
 0x169   :  { %v229_v1 = vsel %vm228_vm5, %v220_v56, %v227_v63 }
 0x16a   :  { %v232_v2 = vsel %vm230_vm6, %v231_v0, %v229_v1 }
 0x16b   :  { %v234_v4 = vmul.f32 0.38941833, %v232_v2 }
 0x16d   :  { %v235_v5 = vsub.f32 %v233_v3, %v234_v4 }
 0x16f   :  { %v238_v7 = vsel %vm236_vm7, %v235_v5, %v292_v6 }
 0x170   :  { %v239_v8 = vsel %vm213_vm4, %v238_v7, %v204_v50 }
 0x171   :  { %v240_v9 = vmul.f32 16.0, %v239_v8 }
 0x173   :  { %241 = vst [vmem:[#allocation2] sm:$0xff] %v240_v9 }
 0x174   :  { %252 = dma.vmem_to_hbm [thread:$0]  %s248_s1, 128, %s250_s22, [#allocation3]  }
 0x175   :  { %325 = dma.done.wait [#allocation3], 128  }
 0x176   :  { %326 = vsyncadd [#allocation3], 4294967168 }
 0x177   :  { %257 = vsyncpa [#allocation3], 1 }

</bundles_post_ra>
